<compile_context>
chip_gen: v7x
topology: tpu7x:2x2x1
jax: 0.10.0
libtpu: 0.0.40
codegen_flags: <defaults>
</compile_context>

<pallas_src>
import jax
import jax.numpy as jnp
from jax.experimental import pallas as pl
from jax.experimental.pallas import tpu as pltpu


def _round_up(n, m):
    return ((n + m - 1) // m) * m


def _sublane(dtype):
    # Minimum second-to-last block dim for a dtype (f32: 8, bf16: 16, int8/fp8: 32).
    return max(8, 32 // jnp.dtype(dtype).itemsize)


def _make_spmm_kernel(*, tile_k, k_total, resident_r, needs_cast):
    """(tile_m, tile_k) @ (tile_k, tile_n) MXU step accumulating over grid axis 2."""
    mask_k_tail = (k_total % tile_k) != 0

    def kernel(s_ref, r_ref, o_ref, *scratch):
        k = pl.program_id(2)
        # Output block index is constant across k, so o_ref is resident in VMEM
        # for the whole k sweep and can be used directly as the accumulator when
        # it is f32; otherwise accumulate into the f32 scratch and cast once.
        acc_ref = scratch[0] if needs_cast else o_ref

        @pl.when(k == 0)
        def _init():
            acc_ref[...] = jnp.zeros(acc_ref.shape, acc_ref.dtype)

        s = s_ref[...]
        if mask_k_tail:
            # S is NOT padded in HBM: zero the out-of-range K columns of the
            # boundary block so stale VMEM (possibly NaN) never reaches the MXU.
            col = jax.lax.broadcasted_iota(jnp.int32, s.shape, dimension=1)
            s = jnp.where(col + k * tile_k < k_total, s, jnp.zeros_like(s))

        if resident_r:
            start = pl.multiple_of(k * tile_k, tile_k)
            r = r_ref[pl.ds(start, tile_k), :]
        else:
            r = r_ref[...]

        acc_ref[...] += jnp.dot(s, r, preferred_element_type=jnp.float32)

        if needs_cast:
            @pl.when(k == pl.num_programs(2) - 1)
            def _store():
                o_ref[...] = acc_ref[...].astype(o_ref.dtype)

    return kernel


def _vmem_need(tile_m, tile_k, tile_n, r_bytes, s_item, o_item, needs_cast):
    need = 2 * tile_m * tile_k * s_item        # S double buffer (dominant stream)
    need += r_bytes                            # R: resident slab or double-buffered tile
    need += 2 * tile_m * tile_n * o_item       # output double buffer
    if needs_cast:
        need += tile_m * tile_n * 4            # f32 accumulator scratch
    return need


def aggregate_subreddits(
    x,
    S,
    R,
    *,
    tile_m=1024,
    tile_k=1024,
    tile_n=512,
    compute_dtype=None,
    force_pallas=False,
):
    """Pallas equivalent of AggregateSubreddits.forward.

    x: (num_users, x_dim)        S: (num_users, num_subs)
    R: (num_subs, sub_rep_dim)   returns (num_users, x_dim + sub_rep_dim)
    """
    M, x_dim = x.shape
    Ms, K = S.shape
    Kr, rep_dim = R.shape
    assert M == Ms and K == Kr
    out_dtype = x.dtype

    # Tiny / degenerate problem: let XLA fuse it — a Pallas call cannot win here.
    if not force_pallas and (M * K * rep_dim) < (1 << 22):
        return jnp.concatenate((x, jnp.dot(S, R).astype(out_dtype)), axis=1)

    if compute_dtype is not None:
        # Only a bandwidth win if S/R are already stored narrow (or the cast
        # fuses into their producer); the cast itself is an HBM pass on S.
        S = S.astype(compute_dtype)
        R = R.astype(compute_dtype)

    s_item = jnp.dtype(S.dtype).itemsize
    r_item = jnp.dtype(R.dtype).itemsize
    o_item = jnp.dtype(out_dtype).itemsize
    needs_cast = jnp.dtype(out_dtype) != jnp.dtype(jnp.float32)

    m_align = max(_sublane(S.dtype), _sublane(out_dtype))
    rep_128 = _round_up(rep_dim, 128)

    # Align and cap tile sizes.
    tile_m = _round_up(min(max(tile_m, m_align), _round_up(M, m_align)), m_align)
    tile_k = _round_up(min(max(tile_k, 128), _round_up(K, 128)), 128)
    tile_n = _round_up(min(max(tile_n, 128), rep_128), 128)

    # Shrink tiles until the double-buffered working set fits a conservative
    # VMEM budget (safe on v7x's 64 MiB physical, ample on v5e/v6e 128 MiB).
    budget = 40 << 20
    while True:
        need = _vmem_need(tile_m, tile_k, tile_n, 2 * tile_k * tile_n * r_item,
                          s_item, o_item, needs_cast)
        if need <= budget:
            break
        if tile_k > 128:
            tile_k = max(128, _round_up(tile_k // 2, 128))
        elif tile_m > m_align:
            tile_m = max(m_align, _round_up(tile_m // 2, m_align))
        elif tile_n > 128:
            tile_n = max(128, _round_up(tile_n // 2, 128))
        else:
            break

    n_tiles = pl.cdiv(rep_128, tile_n)
    # v7x has 2 TensorCores: make sure the "parallel" axes expose >= 2 tiles.
    while pl.cdiv(M, tile_m) * n_tiles < 2 and tile_m >= 2 * m_align:
        tile_m = max(m_align, _round_up(tile_m // 2, m_align))

    m_tiles = pl.cdiv(M, tile_m)
    k_tiles = pl.cdiv(K, tile_k)
    M_pad = m_tiles * tile_m
    K_pad = k_tiles * tile_k
    N_pad = n_tiles * tile_n

    # Only the small R operand is zero-padded (its zero K-tail is required so
    # the masked S tail contributes exact zeros).  S streams straight from HBM.
    if (K_pad, N_pad) != (K, rep_dim):
        R = jnp.pad(R, ((0, K_pad - K), (0, N_pad - rep_dim)))

    # Keep R fully VMEM-resident (one DMA for the whole kernel) when the rep
    # dimension is a single tile and it fits; otherwise stream (tile_k, tile_n).
    resident_r = n_tiles == 1 and _vmem_need(
        tile_m, tile_k, tile_n, K_pad * N_pad * r_item, s_item, o_item, needs_cast
    ) <= budget
    r_vmem = K_pad * N_pad * r_item if resident_r else 2 * tile_k * tile_n * r_item
    need = _vmem_need(tile_m, tile_k, tile_n, r_vmem, s_item, o_item, needs_cast)
    vmem_limit = max(32 << 20, int(need * 1.3) + (2 << 20))

    if resident_r:
        r_spec = pl.BlockSpec((K_pad, N_pad), lambda i, j, k: (0, 0))
    else:
        r_spec = pl.BlockSpec((tile_k, tile_n), lambda i, j, k: (k, j))

    kernel = _make_spmm_kernel(
        tile_k=tile_k, k_total=K, resident_r=resident_r, needs_cast=needs_cast)

    cost = pl.CostEstimate(
        flops=2 * M_pad * K_pad * N_pad,
        transcendentals=0,
        bytes_accessed=int(
            M * K * s_item * n_tiles
            + K_pad * N_pad * r_item * (1 if resident_r else m_tiles)
            + M_pad * N_pad * o_item),
    )

    sub_agg = pl.pallas_call(
        kernel,
        out_shape=jax.ShapeDtypeStruct((M_pad, N_pad), out_dtype),
        grid_spec=pltpu.PrefetchScalarGridSpec(
            num_scalar_prefetch=0,
            grid=(m_tiles, n_tiles, k_tiles),
            in_specs=[
                pl.BlockSpec((tile_m, tile_k), lambda i, j, k: (i, k)),   # S tile
                r_spec,                                                   # R slab/tile
            ],
            out_specs=pl.BlockSpec((tile_m, tile_n), lambda i, j, k: (i, j)),
            scratch_shapes=(
                [pltpu.VMEM((tile_m, tile_n), jnp.float32)] if needs_cast else []),
        ),
        compiler_params=pltpu.CompilerParams(
            dimension_semantics=("parallel", "parallel", "arbitrary"),
            vmem_limit_bytes=vmem_limit,
        ),
        cost_estimate=cost,
    )(S, R)

    # Lane-dense layout inside the kernel; slice padding off and concat in XLA.
    return jnp.concatenate((x, sub_agg[:M, :rep_dim]), axis=1)


if __name__ == "__main__":
    key = jax.random.PRNGKey(0)
    keys = jax.random.split(key, 8)

    # --- 1) Toy module shapes (8 users, 16 subs): tiny -> XLA fallback path.
    x0 = jax.random.normal(keys[0], (8, 32), dtype=jnp.float32)
    S0 = jax.random.uniform(keys[1], (8, 16), dtype=jnp.float32)
    R0 = jax.random.uniform(keys[2], (16, 32), dtype=jnp.float32)
    out0 = jax.block_until_ready(aggregate_subreddits(x0, S0, R0))
    ref0 = jnp.concatenate((x0, jnp.dot(S0, R0)), axis=1)
    assert out0.shape == (8, 64)
    assert jnp.allclose(out0, ref0, atol=1e-5, rtol=1e-5)

    # --- 2) Pallas path: ragged M/K (boundary blocks + in-kernel K-tail mask),
    #        resident-R slab, f32 in / f32 out (no scratch accumulator).
    num_users, num_subs, rep_dim, x_dim = 300, 200, 96, 40
    x1 = jax.random.normal(keys[3], (num_users, x_dim), dtype=jnp.float32)
    S1 = jax.random.uniform(keys[4], (num_users, num_subs), dtype=jnp.float32)
    R1 = jax.random.uniform(keys[5], (num_subs, rep_dim), dtype=jnp.float32)
    out1 = jax.block_until_ready(
        aggregate_subreddits(x1, S1, R1, tile_m=128, tile_k=128, force_pallas=True))
    ref1 = jnp.concatenate(
        (x1, jnp.dot(S1, R1, precision=jax.lax.Precision.HIGHEST)), axis=1)
    assert out1.shape == (num_users, x_dim + rep_dim)
    # Default (reduced) MXU f32 precision -> loose tolerance (deliberate tradeoff).
    assert jnp.allclose(out1, ref1, atol=5e-1, rtol=5e-2)

    # --- 3) Streamed-R path (N grid axis, n_tiles > 1), bf16 compute, f32 out.
    rep_dim2 = 300
    R2 = jax.random.uniform(keys[6], (num_subs, rep_dim2), dtype=jnp.float32)
    out2 = jax.block_until_ready(
        aggregate_subreddits(
            x1, S1, R2, tile_m=128, tile_k=128, tile_n=128,
            compute_dtype=jnp.bfloat16, force_pallas=True))
    S1b = S1.astype(jnp.bfloat16).astype(jnp.float32)
    R2b = R2.astype(jnp.bfloat16).astype(jnp.float32)
    ref2 = jnp.concatenate(
        (x1, jnp.dot(S1b, R2b, precision=jax.lax.Precision.HIGHEST)), axis=1)
    assert out2.shape == (num_users, x_dim + rep_dim2)
    assert jnp.allclose(out2, ref2, atol=1e-2, rtol=1e-3)

    # --- 4) bf16 output (x in bf16): exercises the f32 scratch + cast epilogue.
    x3 = x1.astype(jnp.bfloat16)
    out3 = jax.block_until_ready(
        aggregate_subreddits(x3, S1, R1, tile_m=128, tile_k=128, force_pallas=True))
    ref3 = jnp.concatenate(
        (x3.astype(jnp.float32),
         jnp.dot(S1, R1, precision=jax.lax.Precision.HIGHEST)), axis=1)
    assert out3.dtype == jnp.bfloat16
    assert out3.shape == (num_users, x_dim + rep_dim)
    assert jnp.allclose(out3.astype(jnp.float32), ref3, atol=1.0, rtol=5e-2)

    print("KERNEL_OK")
</pallas_src>

<mosaic_0001>
module attributes {stable_mosaic.version = 11 : i64} {
  func.func @kernel(%arg0: i32, %arg1: i32, %arg2: i32, %arg3: memref<128x128xf32, #tpu.memory_space<vmem>>, %arg4: memref<256x128xf32, #tpu.memory_space<vmem>>, %arg5: memref<128x128xf32, #tpu.memory_space<vmem>>) attributes {dimension_semantics = [#tpu.dimension_semantics<parallel>, #tpu.dimension_semantics<parallel>, #tpu.dimension_semantics<arbitrary>], iteration_bounds = array<i64: 3, 1, 2>, scalar_prefetch = 0 : i64, scratch_operands = 0 : i64, tpu.core_type = #tpu.core_type<tc>, window_params = [{transform_indices = @transform_0, window_bounds = array<i64: 128, 128>}, {pipeline_mode = #tpu.pipeline_mode<synchronous>, transform_indices = @transform_1, window_bounds = array<i64: 256, 128>}, {transform_indices = @transform_2, window_bounds = array<i64: 128, 128>}]} {
    %c0_i32 = arith.constant 0 : i32
    %0 = arith.cmpi eq, %arg2, %c0_i32 : i32
    %1 = arith.extui %0 : i1 to i32
    %c0_i32_0 = arith.constant 0 : i32
    %2 = arith.cmpi ne, %1, %c0_i32_0 : i32
    scf.if %2 {
      %cst_9 = arith.constant 0.000000e+00 : f32
      %20 = vector.broadcast %cst_9 : f32 to vector<128x128xf32>
      %c0_10 = arith.constant 0 : index
      %c0_11 = arith.constant 0 : index
      %21 = vector.load %arg5[%c0_10, %c0_11] : memref<128x128xf32, #tpu.memory_space<vmem>>, vector<128x128xf32>
      tpu.vector_store %arg5[%c0_10, %c0_11], %20 {strides = array<i32>} : memref<128x128xf32, #tpu.memory_space<vmem>>, vector<128x128xf32>,
    } else {
    }
    %c0 = arith.constant 0 : index
    %c0_1 = arith.constant 0 : index
    %3 = vector.load %arg3[%c0, %c0_1] : memref<128x128xf32, #tpu.memory_space<vmem>>, vector<128x128xf32>
    %4 = tpu.iota {dimensions = array<i32: 1>} : vector<128x128xi32>
    %c128_i32 = arith.constant 128 : i32
    %5 = arith.muli %arg2, %c128_i32 : i32
    %6 = vector.broadcast %5 : i32 to vector<128x128xi32>
    %7 = arith.addi %4, %6 : vector<128x128xi32>
    %c200_i32 = arith.constant 200 : i32
    %8 = vector.broadcast %c200_i32 : i32 to vector<128x128xi32>
    %9 = arith.cmpi slt, %7, %8 : vector<128x128xi32>
    %cst = arith.constant 0.000000e+00 : f32
    %10 = vector.broadcast %cst : f32 to vector<128x128xf32>
    %11 = arith.select %9, %3, %10 : vector<128x128xi1>, vector<128x128xf32>
    %c128_i32_2 = arith.constant 128 : i32
    %12 = arith.muli %arg2, %c128_i32_2 : i32
    %13 = tpu.assume_multiple %12, 128 : i32
    %14 = arith.index_cast %13 : i32 to index
    %c0_3 = arith.constant 0 : index
    %15 = vector.load %arg4[%14, %c0_3] : memref<256x128xf32, #tpu.memory_space<vmem>>, vector<128x128xf32>
    %c0_4 = arith.constant 0 : index
    %c0_5 = arith.constant 0 : index
    %16 = vector.load %arg5[%c0_4, %c0_5] : memref<128x128xf32, #tpu.memory_space<vmem>>, vector<128x128xf32>
    %cst_6 = arith.constant dense<0.000000e+00> : vector<128x128xf32>
    %17 = tpu.matmul %11, %15, %cst_6 {dimension_numbers = #tpu.dot_dimension_numbers<[1], [0], [0], [1], [0, 0, 1, 1], [], []>} : vector<128x128xf32>, vector<128x128xf32>, vector<128x128xf32> -> vector<128x128xf32>
    %18 = arith.addf %16, %17 : vector<128x128xf32>
    %c0_7 = arith.constant 0 : index
    %c0_8 = arith.constant 0 : index
    %19 = vector.load %arg5[%c0_7, %c0_8] : memref<128x128xf32, #tpu.memory_space<vmem>>, vector<128x128xf32>
    tpu.vector_store %arg5[%c0_7, %c0_8], %18 {strides = array<i32>} : memref<128x128xf32, #tpu.memory_space<vmem>>, vector<128x128xf32>,
    return
  }
  func.func @transform_0(%arg0: i32, %arg1: i32, %arg2: i32) -> (i32, i32) {
    %c0_i32 = arith.constant 0 : i32
    return %arg0, %arg2 : i32, i32
  }
  func.func @transform_1(%arg0: i32, %arg1: i32, %arg2: i32) -> (i32, i32) {
    %c0_i32 = arith.constant 0 : i32
    %c0_i32_0 = arith.constant 0 : i32
    %c0_i32_1 = arith.constant 0 : i32
    return %c0_i32, %c0_i32_0 : i32, i32
  }
  func.func @transform_2(%arg0: i32, %arg1: i32, %arg2: i32) -> (i32, i32) {
    %c0_i32 = arith.constant 0 : i32
    return %arg0, %arg1 : i32, i32
  }
}

</mosaic_0001>

<bundles_post_ra>
// kernel: tpu_custom_call.1
= control target key start
LH: loop header
LB: loop body
LE: loop exit
PB: predicated region body
PF: predicated region fallthrough
CT: control target
= control target key end

     0   :  { %s1687_s0 = inlined_call_operand.vmem [shape: f32[300,200], index: 0, kind: input, shape index: {}]   ;;  %s1688_s1 = inlined_call_operand.vmem [shape: f32[256,128], index: 1, kind: input, shape index: {}]   ;;  %s1689_s2 = inlined_call_operand.hbm [shape: f32[384,128], index: 2, kind: output, shape index: {}]  }
   0x1   :  { %1692 = sst [smem:[#allocation8_spill]] %s1687_s0 }
   0x2   :  { %7 = vsyncpa [#allocation4], 0 }
   0x3   :  { %9 = vsyncpa [#allocation4 + $0x1], 0  ;;  %s1296_s9 = smov 0   ;;  %s1298_s10 = smov 0  }
   0x4   :  { %s1300_s11 = smov 0   ;;  %s1302_s12 = smov 0  }
   0x5   :  { %s1304_s13 = smov 0   ;;  %s1306_s14 = smov 0  }
   0x6   :  { %s1308_s15 = smov 0   ;;  %s1310_s16 = smov 0  }
   0x7   :  { %s1312_s17 = smov 0   ;;  %s1314_s18 = smov 0  }
   0x8 LB: > { %s761_s19 = sadd.s32 4294967295, %s1243_s18   ;;  %s762_s20 = sadd.s32 4294967294, %s1243_s18   ;;  %s1243_s18 = sphi %s1314_s18, %s15_s18   ;;  %s1239_s17 = sphi %s1312_s17, %s1712_s17   ;;  %s1235_s16 = sphi %s1310_s16, %s1711_s16   ;;  %s1231_s15 = sphi %s1308_s15, %s1710_s15   ;;  %s1227_s14 = sphi %s1306_s14, %s1709_s14   ;;  %s1223_s13 = sphi %s1304_s13, %s1708_s13   ;;  %s1219_s12 = sphi %s1302_s12, %s1707_s12   ;;  %s1215_s11 = sphi %s1300_s11, %s1706_s11   ;;  %s1211_s10 = sphi %s1298_s10, %s1705_s10   ;;  %s1207_s9 = sphi %s1296_s9, %s1704_s9  }
   0x9   : > { %s27_s21 = sadd.s32 1, %s1235_s16  ;;  %s34_s22 = sadd.s32 1, %s1239_s17 }
   0xa   : > { %p28_p0 = scmp.ge.s32.totalorder %s27_s21, 2  ;;  %s43_s23 = sadd.s32 1, %s1223_s13 }
   0xb   : > { %p50_p1 = scmp.ne.s32.totalorder %s1223_s13, %s1219_s12  ;;  %p51_p2 = scmp.eq.s32.totalorder %s1243_s18, 0 }
   0xc   : > { %s1714_s21 = smov (%p28_p0, %s27_s21), 0  ;;  %s1716_s22 = smov (!%p28_p0, %s34_s22), %s1239_s17 }
   0xd   : > { %1693 = sst [smem:[#allocation6_spill]] %s1714_s21  ;;  %s39_s24 = ssub.s32 %s1235_s16, %s1714_s21 }
   0xe   : > { %p1359_p3 = por %p51_p2, %p50_p1  ;;  %p36_p4 = scmp.ge.s32.totalorder %s1716_s22, 3 }
   0xf   : > { %s92_s26 = sadd.s32 1, %s1215_s11  ;;  %p102_p5 = scmp.ne.s32.totalorder %s1215_s11, %s1211_s10 }
  0x10   : > { %p103_p6 = scmp.eq.s32.totalorder %s761_s19, 5  ;;  %s1718_s22 = smov (%p36_p4, %s1716_s22), 0 }
  0x11   : > { %1695 = sst [smem:[#allocation7_spill]] %s1718_s22  ;;  %p108_p8 = scmp.ne.s32.totalorder %s1211_s10, %s1207_s9 }
  0x12   : > { %p1368_p7 = por %p103_p6, %p102_p5  ;;  %s38_s28 = ssub.s32 %s1239_s17, %s1718_s22 }
  0x13   : > { %p109_p9 = scmp.eq.s32.totalorder %s762_s20, 5  ;;  %s40_s29 = sor.u32 %s39_s24, %s38_s28 }
  0x14   : > { %p90_p10 = scmp.eq.s32.totalorder %s38_s28, 0  ;;  %p41_p11 = scmp.eq.s32.totalorder %s40_s29, 0 }
  0x15   : > { %p1376_p12 = por %p109_p9, %p108_p8  ;;  %p764_p13 = scmp.ge.s32.totalorder %s1243_s18, 6 }
  0x16   : > { %s1381_s3 = scalar_select %p90_p10, %s1215_s11, %s92_s26  }
  0x17   : > { %s1384_s4 = scalar_select %p41_p11, %s1223_s13, %s43_s23  }
  0x18   : > { %128 = sbr.rel (%p764_p13) target bundleno = 87 (0x57), region = 20 }
  0x1f   : > { %131 = sbr.rel (!%p1359_p3) target bundleno = 87 (0x57), region = 24  ;;  %s133_s5 = sand.u32 (%p1359_p3), 1, %s1223_s13  }
  0x20   : > { %s766_s6 = sshll.u32 (%p1359_p3), %s1239_s17, 4  ;;  %s765_s7 = sshll.u32 (%p1359_p3), %s133_s5, 7 }
  0x21   : > { %s137_s8 = ssub.s32 (%p1359_p3), 38, %s766_s6  ;;  %s807_s19 = sshll.u32 (%p1359_p3), %s1239_s17, 5 }
  0x22   : > { %p138_p0 = scmp.lt.s32.totalorder (%p1359_p3), %s137_s8, 16  ;;  %s143_s20 = sadd.s32 (%p1359_p3), %s1235_s16, %s807_s19 }
  0x23   : > { %s770_s24 = sshll.u32 (%p1359_p3), %s143_s20, 3  ;;  %s1698_s0 = sld [smem:[#allocation8_spill]] (%p1359_p3) }
  0x24   : > { %s1401_s29 = scalar_lea.vmem (%p1359_p3), [#allocation2], %s765_s7  }
  0x26   : > { %s1720_s8 = smov (!%p138_p0, %s137_s8), 16 }
  0x27   : > { %s767_s23 = sshll.u32 %s1720_s8, 7 }
  0x28   : > { %p771_p1 = scmp.eq.s32.totalorder %s767_s23, 0 }
  0x29   : > { %s1399_s25 = scalar_lea.vmem %s1698_s0, %s770_s24   ;;  %s1404_s5 = sshrl.u32 (!%p771_p1), %s1720_s8, 4 }
  0x2a   : > { %148 = sbr.rel (%p771_p1) target bundleno = 87 (0x57), region = 28  ;;  %p772_p2 = scmp.le.s32.totalorder (!%p771_p1), %s1404_s5, 0 }
  0x31   : > { %703 = sbr.rel (%p772_p2) target bundleno = 66 (0x42), region = 127  ;;  %s1699_s6 = smov (!%p772_p2), %s1401_s29 }
  0x32   : > { %s1700_s19 = smov (!%p772_p2), %s1399_s25  ;;  %s1413_s20 = smov (!%p772_p2), 0  }
  0x33   : > { %s1415_s24 = smov (!%p772_p2), 0  }
  0x38 LB: >> { %v240_v0 = vld [vmem:[%s1251_s19] sm:$0xff]  ;;  %v242_v1 = vld [vmem:[%s1251_s19 + $0x10] sm:$0xff]  ;;  %s272_s7 = sadd.s32 1, %s1255_s20  ;;  %s234_s24 = sadd.s32 1, %s1259_s24   ;;  %s1259_s24 = sphi %s1415_s24, %s234_s24   ;;  %s1255_s20 = sphi %s1413_s20, %s1701_s20   ;;  %s1251_s19 = sphi %s1700_s19, %s277_s19   ;;  %s1247_s6 = sphi %s1699_s6, %s278_s6  }
  0x39   : >> { %v244_v2 = vld [vmem:[%s1251_s19 + $0x20] sm:$0xff]  ;;  %241 = vst [vmem:[%s1247_s6] sm:$0xff] %v240_v0  ;;  %243 = vst [vmem:[%s1247_s6 + $0x8] sm:$0xff] %v242_v1  ;;  %v246_v3 = vld [vmem:[%s1251_s19 + $0x30] sm:$0xff]  ;;  %p273_p3 = scmp.ge.s32.totalorder %s272_s7, %s1404_s5  ;;  %p233_p4 = scmp.ge.s32.totalorder %s234_s24, %s1404_s5 }
  0x3a   : >> { %245 = vst [vmem:[%s1247_s6 + $0x10] sm:$0xff] %v244_v2  ;;  %v248_v4 = vld [vmem:[%s1251_s19 + $0x40] sm:$0xff]  ;;  %v250_v5 = vld [vmem:[%s1251_s19 + $0x50] sm:$0xff]  ;;  %247 = vst [vmem:[%s1247_s6 + $0x18] sm:$0xff] %v246_v3 }
  0x3b   : >> { %249 = vst [vmem:[%s1247_s6 + $0x20] sm:$0xff] %v248_v4  ;;  %251 = vst [vmem:[%s1247_s6 + $0x28] sm:$0xff] %v250_v5  ;;  %v252_v6 = vld [vmem:[%s1251_s19 + $0x60] sm:$0xff]  ;;  %v254_v7 = vld [vmem:[%s1251_s19 + $0x70] sm:$0xff]  ;;  %s1722_s7 = smov (%p273_p3, %s272_s7), 0  ;;  %236 = sbr.rel (!%p233_p4) target bundleno = 56 (0x38), region = 133 }
  0x3c   : >> { %v256_v8 = vld [vmem:[%s1251_s19 + $0x80] sm:$0xff]  ;;  %253 = vst [vmem:[%s1247_s6 + $0x30] sm:$0xff] %v252_v6  ;;  %255 = vst [vmem:[%s1247_s6 + $0x38] sm:$0xff] %v254_v7  ;;  %v258_v9 = vld [vmem:[%s1251_s19 + $0x90] sm:$0xff]  ;;  %s773_s23 = sshll.u32 %s1722_s7, 8  ;;  %s774_s26 = sshll.u32 %s1722_s7, 7 }
  0x3d   : >> { %257 = vst [vmem:[%s1247_s6 + $0x40] sm:$0xff] %v256_v8  ;;  %v260_v10 = vld [vmem:[%s1251_s19 + $0xa0] sm:$0xff]  ;;  %v262_v11 = vld [vmem:[%s1251_s19 + $0xb0] sm:$0xff]  ;;  %259 = vst [vmem:[%s1247_s6 + $0x48] sm:$0xff] %v258_v9  ;;  %s1701_s20 = smov %s1722_s7 }
  0x3e   : >> { %261 = vst [vmem:[%s1247_s6 + $0x50] sm:$0xff] %v260_v10  ;;  %263 = vst [vmem:[%s1247_s6 + $0x58] sm:$0xff] %v262_v11  ;;  %v264_v12 = vld [vmem:[%s1251_s19 + $0xc0] sm:$0xff]  ;;  %v266_v13 = vld [vmem:[%s1251_s19 + $0xd0] sm:$0xff] }
  0x3f   : >> { %v268_v14 = vld [vmem:[%s1251_s19 + $0xe0] sm:$0xff]  ;;  %265 = vst [vmem:[%s1247_s6 + $0x60] sm:$0xff] %v264_v12  ;;  %267 = vst [vmem:[%s1247_s6 + $0x68] sm:$0xff] %v266_v13  ;;  %v270_v15 = vld [vmem:[%s1251_s19 + $0xf0] sm:$0xff]  ;;  %s277_s19 = scalar_lea.vmem %s1399_s25, %s773_s23  }
  0x40   : >> { %269 = vst [vmem:[%s1247_s6 + $0x70] sm:$0xff] %v268_v14  ;;  %271 = vst [vmem:[%s1247_s6 + $0x78] sm:$0xff] %v270_v15  ;;  %s278_s6 = scalar_lea.vmem %s1401_s29, %s774_s26 [#allocation2]  }
  0x42 PF: > { %s1473_s28 = sand.u32 15, %s1720_s8   ;;  %s808_s23 = sshll.u32 %s1404_s5, 8 }
  0x43   : > { %s1477_s26 = scalar_lea.vmem %s1399_s25, %s808_s23   ;;  %s809_s0 = sshll.u32 %s1404_s5, 7 }
  0x44   : > { %s285_s22 = scalar_lea.vmem %s1401_s29, %s809_s0 [#allocation2]   ;;  %p778_p5 = scmp.le.s32.totalorder %s1473_s28, 0 }
  0x45   : > { %s1261_s7 = smov (!%p778_p5), %s285_s22   ;;  %s1265_s24 = smov (!%p778_p5), %s1477_s26  }
  0x46   : > { %717 = sbr.rel (%p778_p5) target bundleno = 87 (0x57), region = 138  ;;  %s1269_s21 = smov (!%p778_p5), 0  }
  0x47   : > { %s1273_s6 = smov (!%p778_p5), 0  }
  0x4d LB: >> { %v295_v16 = vld [vmem:[%s1267_s24] sm:$0xff]  ;;  %s297_s8 = sadd.s32 1, %s1271_s21  ;;  %s289_s6 = sadd.s32 1, %s1275_s6   ;;  %s1275_s6 = sphi %s1273_s6, %s289_s6   ;;  %s1271_s21 = sphi %s1269_s21, %s1270_s21   ;;  %s1267_s24 = sphi %s1265_s24, %s302_s24   ;;  %s1263_s7 = sphi %s1261_s7, %s303_s7  }
  0x4e   : >> { %296 = vst [vmem:[%s1263_s7] sm:$0xff] %v295_v16  ;;  %p298_p6 = scmp.ge.s32.totalorder %s297_s8, %s1473_s28  ;;  %p288_p8 = scmp.ge.s32.totalorder %s289_s6, %s1473_s28 }
  0x50   : >> { %s1724_s8 = smov (%p298_p6, %s297_s8), 0  ;;  %291 = sbr.rel (!%p288_p8) target bundleno = 77 (0x4d), region = 144 }
  0x51   : >> { %s779_s0 = sshll.u32 %s1724_s8, 4  ;;  %s780_s25 = sshll.u32 %s1724_s8, 3 }
  0x52   : >> { %s302_s24 = scalar_lea.vmem %s1477_s26, %s779_s0   ;;  %s303_s7 = scalar_lea.vmem %s285_s22, %s780_s25 [#allocation2]  }
  0x53   : >> { %s1270_s21 = smov %s1724_s8  }
  0x57 PF: > { %p781_p9 = scmp.ge.s32.totalorder %s1243_s18, 1  ;;  %p308_p10 = scmp.lt.s32.totalorder %s1243_s18, 7 }
  0x59   : > { %p309_p11 = pnand %p781_p9, %p308_p10 }
  0x5a   : > { %s315_s21 = sand.u32 (!%p309_p11), 1, %s1219_s12   ;;  %s333_s29 = sand.u32 (!%p309_p11), 1, %s1211_s10  }
  0x5b   : > { %312 = sbr.rel (%p309_p11) target bundleno = 386 (0x182), region = 76  ;;  %s782_s5 = sshll.u32 (!%p309_p11), %s315_s21, 7 }
  0x5c   : > { %s783_s19 = sshll.u32 (!%p309_p11), %s333_s29, 7  ;;  %s1492_s20 = scalar_lea.vmem (!%p309_p11), [#allocation2], %s782_s5 }
  0x5d   : > { %s1494_s22 = scalar_lea.vmem (!%p309_p11), [#allocation3], %s783_s19  ;;  %p784_p13 = scmp.ne.s32.totalorder (!%p309_p11), %s1227_s14, 0 }
  0x62   : > { %345 = sbr.rel (%p784_p13) target bundleno = 107 (0x6b), region = 84  ;;  %v1277_v17 = vmov (!%p784_p13), 0.0  }
  0x63   : > { %346 = vst [vmem:[%s1494_s22] sm:$0xff] (!%p784_p13), %v1277_v17  ;;  %347 = vst [vmem:[%s1494_s22 + $0x8] sm:$0xff] (!%p784_p13), %v1277_v17 }
  0x64   : > { %348 = vst [vmem:[%s1494_s22 + $0x10] sm:$0xff] (!%p784_p13), %v1277_v17  ;;  %349 = vst [vmem:[%s1494_s22 + $0x18] sm:$0xff] (!%p784_p13), %v1277_v17 }
  0x65   : > { %350 = vst [vmem:[%s1494_s22 + $0x20] sm:$0xff] (!%p784_p13), %v1277_v17  ;;  %351 = vst [vmem:[%s1494_s22 + $0x28] sm:$0xff] (!%p784_p13), %v1277_v17 }
  0x66   : > { %352 = vst [vmem:[%s1494_s22 + $0x30] sm:$0xff] (!%p784_p13), %v1277_v17  ;;  %353 = vst [vmem:[%s1494_s22 + $0x38] sm:$0xff] (!%p784_p13), %v1277_v17 }
  0x67   : > { %354 = vst [vmem:[%s1494_s22 + $0x40] sm:$0xff] (!%p784_p13), %v1277_v17  ;;  %355 = vst [vmem:[%s1494_s22 + $0x48] sm:$0xff] (!%p784_p13), %v1277_v17 }
  0x68   : > { %356 = vst [vmem:[%s1494_s22 + $0x50] sm:$0xff] (!%p784_p13), %v1277_v17  ;;  %357 = vst [vmem:[%s1494_s22 + $0x58] sm:$0xff] (!%p784_p13), %v1277_v17 }
  0x69   : > { %358 = vst [vmem:[%s1494_s22 + $0x60] sm:$0xff] %v1277_v17  ;;  %359 = vst [vmem:[%s1494_s22 + $0x68] sm:$0xff] %v1277_v17 }
  0x6a   : > { %360 = vst [vmem:[%s1494_s22 + $0x70] sm:$0xff] %v1277_v17  ;;  %361 = vst [vmem:[%s1494_s22 + $0x78] sm:$0xff] %v1277_v17 }
  0x6b PF: > { %s785_s12 = sshll.u32 %s1227_s14, 7  ;;  %v378_v18 = vlaneseq  ;;  %v362_v30 = vld [vmem:[%s1492_s20] sm:$0xff]  ;;  %v363_v48 = vld [vmem:[%s1492_s20 + $0x8] sm:$0xff]  ;;  %v364_v50 = vld [vmem:[%s1492_s20 + $0x10] sm:$0xff]  ;;  %s810_s14 = sshll.u32 %s1231_s15, 11 }
  0x6c   : > { %s1517_s26 = scalar_lea.vmem %s1688_s1, %s785_s12  ;;  %v381_v19 = vstv %s785_s12  ;;  %v370_v31 = vld [vmem:[%s1492_s20 + $0x40] sm:$0xff]  ;;  %v371_v49 = vld [vmem:[%s1492_s20 + $0x48] sm:$0xff]  ;;  %v372_v51 = vld [vmem:[%s1492_s20 + $0x50] sm:$0xff]  ;;  %s625_s7 = sshll.u32 %s1494_s22, 4  ;;  %s1621_s7 = int_to_ptr.vmem [resolvable:$true] %s625_s7 }
  0x6d   : > { %v401_v20 = vld [vmem:[%s1517_s26] sm:$0xff]  ;;  %v402_v21 = vld [vmem:[%s1517_s26 + $0x8] sm:$0xff]  ;;  %v403_v22 = vld [vmem:[%s1517_s26 + $0x10] sm:$0xff]  ;;  %v379_v23 = vand.u32 127, %v378_v18  ;;  %s1619_s6 = scalar_lea.hbm %s1689_s2, %s810_s14  ;;  %s1629_s8 = scalar_lea.sflag [#allocation4], %s333_s29 }
  0x6e   : > { %v899_v24 = vpack.c.bf16 %v402_v21, %v401_v20  ;;  %v404_v25 = vld [vmem:[%s1517_s26 + $0x18] sm:$0xff]  ;;  %v405_v27 = vld [vmem:[%s1517_s26 + $0x20] sm:$0xff]  ;;  %v406_v28 = vld [vmem:[%s1517_s26 + $0x28] sm:$0xff]  ;;  %s1101_s0 = scalar_lea.vmem %s1621_s7, 2048  ;;  %s1278_s25 = smov [#allocation3]  }
  0x6f   : > { %v903_v26 = vpack.c.bf16 %v404_v25, %v403_v22  ;;  %v1525_v29 = vadd.s32 %v381_v19, %v379_v23  ;;  %v907_v32 = vpack.c.bf16 %v406_v28, %v405_v27  ;;  %v407_v33 = vld [vmem:[%s1517_s26 + $0x30] sm:$0xff]  ;;  %v408_v34 = vld [vmem:[%s1517_s26 + $0x38] sm:$0xff]  ;;  %v409_v36 = vld [vmem:[%s1517_s26 + $0x40] sm:$0xff]  ;;  %p1102_p0 = scmp.ne.s32.totalorder %s1621_s7, %s1101_s0  ;;  %s1105_s21 = sshll.u32 %s1278_s25, 4  ;;  %s1106_s21 = int_to_ptr.vmem [resolvable:$false] %s1105_s21 }
  0x70   : > { %900 = vmatprep.subr.bf16.mxu0 %v899_v24  ;;  %931 = vmatprep.subr.bf16.mxu1 %v899_v24  ;;  %v911_v35 = vpack.c.bf16 %v408_v34, %v407_v33  ;;  %v410_v37 = vld [vmem:[%s1517_s26 + $0x48] sm:$0xff]  ;;  %v411_v39 = vld [vmem:[%s1517_s26 + $0x50] sm:$0xff]  ;;  %v412_v40 = vld [vmem:[%s1517_s26 + $0x58] sm:$0xff]  ;;  %s1107_s5 = scalar_lea.vmem %s1106_s21, 4096  ;;  %p1108_p3 = scmp.lt.s32.totalorder %s1621_s7, %s1106_s21 }
  0x71   : > { %902 = vmatpush3.bf16.msra.mxu0 %v899_v24  ;;  %939 = vmatpush3.bf16.msra.mxu1 %v899_v24  ;;  %vm383_vm0 = vcmp.lt.s32.totalorder %v1525_v29, 200  ;;  %v915_v38 = vpack.c.bf16 %v410_v37, %v409_v36  ;;  %v919_v41 = vpack.c.bf16 %v412_v40, %v411_v39  ;;  %v413_v42 = vld [vmem:[%s1517_s26 + $0x60] sm:$0xff]  ;;  %v414_v43 = vld [vmem:[%s1517_s26 + $0x68] sm:$0xff]  ;;  %v415_v45 = vld [vmem:[%s1517_s26 + $0x70] sm:$0xff]  ;;  %p1103_p1 = pnand %p1102_p0, %p1368_p7  ;;  %p1109_p4 = scmp.lt.s32.totalorder %s1107_s5, %s1101_s0 }
  0x72   : > { %904 = vmatprep.subr.bf16.mxu0 %v903_v26  ;;  %932 = vmatprep.subr.bf16.mxu1 %v903_v26  ;;  %v923_v44 = vpack.c.bf16 %v414_v43, %v413_v42  ;;  %v416_v46 = vld [vmem:[%s1517_s26 + $0x78] sm:$0xff]  ;;  %v366_v54 = vld [vmem:[%s1492_s20 + $0x20] sm:$0xff]  ;;  %v367_v56 = vld [vmem:[%s1492_s20 + $0x28] sm:$0xff] }
  0x73   : > { %875 = vmatprep.mubr.msk.f32.mxu0 %vm383_vm0, %v362_v30  ;;  %887 = vmatprep.mubr.msk.f32.mxu1 %vm383_vm0, %v370_v31  ;;  %v927_v47 = vpack.c.bf16 %v416_v46, %v415_v45  ;;  %v365_v52 = vld [vmem:[%s1492_s20 + $0x18] sm:$0xff]  ;;  %v374_v55 = vld [vmem:[%s1492_s20 + $0x60] sm:$0xff]  ;;  %v375_v57 = vld [vmem:[%s1492_s20 + $0x68] sm:$0xff]  ;;  %p1104_p2 = pneg %p1103_p1  ;;  %p1110_p5 = por %p1109_p4, %p1108_p3 }
  0x74   : > { %v373_v53 = vld [vmem:[%s1492_s20 + $0x58] sm:$0xff]  ;;  %v368_v58 = vld [vmem:[%s1492_s20 + $0x30] sm:$0xff]  ;;  %v418_v62 = vld [vmem:[%s1494_s22 + $0x8] sm:$0xff] }
  0x75   : > { %906 = vmatpush3.bf16.msra.mxu0 %v903_v26  ;;  %940 = vmatpush3.bf16.msra.mxu1 %v903_v26  ;;  %v376_v59 = vld [vmem:[%s1492_s20 + $0x70] sm:$0xff]  ;;  %v369_v60 = vld [vmem:[%s1492_s20 + $0x38] sm:$0xff]  ;;  %v426_v63 = vld [vmem:[%s1494_s22 + $0x48] sm:$0xff]  ;;  %p1111_p6 = pnand %p1110_p5, %p1104_p2 }
  0x76   : > { %908 = vmatprep.subr.bf16.mxu0 %v907_v32  ;;  %933 = vmatprep.subr.bf16.mxu1 %v907_v32  ;;  %v377_v61 = vld [vmem:[%s1492_s20 + $0x78] sm:$0xff]  ;;  %v417_v0 = vld [vmem:[%s1494_s22] sm:$0xff]  ;;  %v419_v12 = vld [vmem:[%s1494_s22 + $0x10] sm:$0xff] }
  0x77   : > { %v425_v1 = vld [vmem:[%s1494_s22 + $0x40] sm:$0xff]  ;;  %v420_v10 = vld [vmem:[%s1494_s22 + $0x18] sm:$0xff]  ;;  %v427_v13 = vld [vmem:[%s1494_s22 + $0x50] sm:$0xff] }
  0x78   : > { %v428_v11 = vld [vmem:[%s1494_s22 + $0x58] sm:$0xff]  ;;  %v422_v22 = vld [vmem:[%s1494_s22 + $0x28] sm:$0xff]  ;;  %v421_v24 = vld [vmem:[%s1494_s22 + $0x20] sm:$0xff] }
  0x79   : > { %910 = vmatpush3.bf16.msra.mxu0 %v907_v32  ;;  %941 = vmatpush3.bf16.msra.mxu1 %v907_v32  ;;  %v430_v23 = vld [vmem:[%s1494_s22 + $0x68] sm:$0xff]  ;;  %v429_v25 = vld [vmem:[%s1494_s22 + $0x60] sm:$0xff]  ;;  %v424_v34 = vld [vmem:[%s1494_s22 + $0x38] sm:$0xff] }
  0x7a   : > { %912 = vmatprep.subr.bf16.mxu0 %v911_v35  ;;  %934 = vmatprep.subr.bf16.mxu1 %v911_v35  ;;  %v423_v36 = vld [vmem:[%s1494_s22 + $0x30] sm:$0xff] }
  0x7b   : > { %v431_v37 = vld [vmem:[%s1494_s22 + $0x70] sm:$0xff] }
  0x7d   : > { %914 = vmatpush3.bf16.msra.mxu0 %v911_v35  ;;  %942 = vmatpush3.bf16.msra.mxu1 %v911_v35  ;;  %v432_v35 = vld [vmem:[%s1494_s22 + $0x78] sm:$0xff] }
  0x7e   : > { %916 = vmatprep.subr.bf16.mxu0 %v915_v38  ;;  %935 = vmatprep.subr.bf16.mxu1 %v915_v38 }
  0x81   : > { %918 = vmatpush3.bf16.msra.mxu0 %v915_v38  ;;  %943 = vmatpush3.bf16.msra.mxu1 %v915_v38 }
  0x82   : > { %920 = vmatprep.subr.bf16.mxu0 %v919_v41  ;;  %936 = vmatprep.subr.bf16.mxu1 %v919_v41 }
  0x85   : > { %922 = vmatpush3.bf16.msra.mxu0 %v919_v41  ;;  %944 = vmatpush3.bf16.msra.mxu1 %v919_v41 }
  0x86   : > { %924 = vmatprep.subr.bf16.mxu0 %v923_v44  ;;  %937 = vmatprep.subr.bf16.mxu1 %v923_v44 }
  0x89   : > { %926 = vmatpush3.bf16.msra.mxu0 %v923_v44  ;;  %945 = vmatpush3.bf16.msra.mxu1 %v923_v44 }
  0x8a   : > { %928 = vmatprep.subr.bf16.mxu0 %v927_v47  ;;  %938 = vmatprep.subr.bf16.mxu1 %v927_v47 }
  0x8d   : > { %930 = vmatpush3.bf16.msra.mxu0 %v927_v47  ;;  %946 = vmatpush3.bf16.msra.mxu1 %v927_v47 }
  0x90   : > { %876 = vmatmul.mubr.msk.f32.vlgmr.msra.gmra.mrb[0].mxu0 %vm383_vm0, %v363_v48  ;;  %888 = vmatmul.mubr.msk.f32.vlgmr.msra.gmra.mrb[0].mxu1 %vm383_vm0, %v371_v49 }
  0x91   : > { %878 = vmatprep.mubr.msk.f32.mxu0 %vm383_vm0, %v364_v50  ;;  %890 = vmatprep.mubr.msk.f32.mxu1 %vm383_vm0, %v372_v51 }
  0x94   : > { %879 = vmatmul.mubr.msk.f32.gmra.mrb[2].mxu0 %vm383_vm0, %v365_v52  ;;  %891 = vmatmul.mubr.msk.f32.gmra.mrb[2].mxu1 %vm383_vm0, %v373_v53 }
  0x95   : > { %881 = vmatprep.mubr.msk.f32.mxu0 %vm383_vm0, %v366_v54  ;;  %893 = vmatprep.mubr.msk.f32.mxu1 %vm383_vm0, %v374_v55 }
  0x98   : > { %882 = vmatmul.mubr.msk.f32.gmra.mrb[4].mxu0 %vm383_vm0, %v367_v56  ;;  %894 = vmatmul.mubr.msk.f32.gmra.mrb[4].mxu1 %vm383_vm0, %v375_v57 }
  0x99   : > { %884 = vmatprep.mubr.msk.f32.mxu0 %vm383_vm0, %v368_v58  ;;  %896 = vmatprep.mubr.msk.f32.mxu1 %vm383_vm0, %v376_v59 }
  0x9c   : > { %885 = vmatmul.mubr.msk.f32.gmra.mrb[6].mxu0 %vm383_vm0, %v369_v60  ;;  %897 = vmatmul.mubr.msk.f32.gmra.mrb[6].mxu1 %vm383_vm0, %v377_v61 }
 0x163   : > { %v877_v2 = vpop.f32.mrb[0].mxu0  ;;  %v889_v3 = vpop.f32.mrb[0].mxu1 }
 0x164   : > { %v579_v4 = vadd.f32 %v877_v2, %v418_v62  ;;  %v587_v5 = vadd.f32 %v889_v3, %v426_v63  ;;  %v499_v6 = vpop.f32.mrb[1].mxu0  ;;  %v539_v7 = vpop.f32.mrb[1].mxu1 }
 0x165   : > { %v578_v8 = vadd.f32 %v499_v6, %v417_v0  ;;  %v586_v9 = vadd.f32 %v539_v7, %v425_v1 }
 0x166   : > { %595 = vst [vmem:[%s1494_s22 + $0x8] sm:$0xff] %v579_v4  ;;  %603 = vst [vmem:[%s1494_s22 + $0x48] sm:$0xff] %v587_v5 }
 0x167   : > { %594 = vst [vmem:[%s1494_s22] sm:$0xff] %v578_v8  ;;  %602 = vst [vmem:[%s1494_s22 + $0x40] sm:$0xff] %v586_v9  ;;  %v880_v14 = vpop.f32.mrb[2].mxu0  ;;  %v892_v15 = vpop.f32.mrb[2].mxu1 }
 0x168   : > { %v581_v16 = vadd.f32 %v880_v14, %v420_v10  ;;  %v589_v17 = vadd.f32 %v892_v15, %v428_v11  ;;  %v509_v18 = vpop.f32.mrb[3].mxu0  ;;  %v549_v19 = vpop.f32.mrb[3].mxu1 }
 0x169   : > { %v580_v20 = vadd.f32 %v509_v18, %v419_v12  ;;  %v588_v21 = vadd.f32 %v549_v19, %v427_v13 }
 0x16a   : > { %597 = vst [vmem:[%s1494_s22 + $0x18] sm:$0xff] %v581_v16  ;;  %605 = vst [vmem:[%s1494_s22 + $0x58] sm:$0xff] %v589_v17 }
 0x16b   : > { %596 = vst [vmem:[%s1494_s22 + $0x10] sm:$0xff] %v580_v20  ;;  %604 = vst [vmem:[%s1494_s22 + $0x50] sm:$0xff] %v588_v21  ;;  %v883_v26 = vpop.f32.mrb[4].mxu0  ;;  %v895_v27 = vpop.f32.mrb[4].mxu1 }
 0x16c   : > { %v583_v28 = vadd.f32 %v883_v26, %v422_v22  ;;  %v591_v29 = vadd.f32 %v895_v27, %v430_v23  ;;  %v519_v30 = vpop.f32.mrb[5].mxu0  ;;  %v559_v31 = vpop.f32.mrb[5].mxu1 }
 0x16d   : > { %v582_v32 = vadd.f32 %v519_v30, %v421_v24  ;;  %v590_v33 = vadd.f32 %v559_v31, %v429_v25 }
 0x16e   : > { %599 = vst [vmem:[%s1494_s22 + $0x28] sm:$0xff] %v583_v28  ;;  %607 = vst [vmem:[%s1494_s22 + $0x68] sm:$0xff] %v591_v29 }
 0x16f   : > { %598 = vst [vmem:[%s1494_s22 + $0x20] sm:$0xff] %v582_v32  ;;  %606 = vst [vmem:[%s1494_s22 + $0x60] sm:$0xff] %v590_v33  ;;  %v886_v38 = vpop.f32.mrb[6].mxu0  ;;  %v898_v39 = vpop.f32.mrb[6].mxu1 }
 0x170   : > { %v585_v40 = vadd.f32 %v886_v38, %v424_v34  ;;  %v593_v41 = vadd.f32 %v898_v39, %v432_v35  ;;  %v529_v42 = vpop.f32.mrb[7].mxu0  ;;  %v569_v43 = vpop.f32.mrb[7].mxu1 }
 0x171   : > { %v584_v44 = vadd.f32 %v529_v42, %v423_v36  ;;  %v592_v45 = vadd.f32 %v569_v43, %v431_v37 }
 0x172   : > { %601 = vst [vmem:[%s1494_s22 + $0x38] sm:$0xff] %v585_v40  ;;  %609 = vst [vmem:[%s1494_s22 + $0x78] sm:$0xff] %v593_v41 }
 0x173   : > { %600 = vst [vmem:[%s1494_s22 + $0x30] sm:$0xff] %v584_v44  ;;  %608 = vst [vmem:[%s1494_s22 + $0x70] sm:$0xff] %v592_v45 }
 0x174   : > { %1114 = shalt.err (!%p1111_p6)
}
 0x175   : > { %s1115_s29 = scalar_lea.hbm %s1619_s6, 2048  ;;  %s1119_s22 = scalar_lea.hbm %s1689_s2, 6144 }
 0x176   : > { %p1116_p8 = scmp.ne.s32.totalorder %s1619_s6, %s1115_s29  ;;  %p1120_p11 = scmp.lt.u32.totalorder %s1619_s6, %s1689_s2 }
 0x177   : > { %p1121_p13 = scmp.lt.u32.totalorder %s1119_s22, %s1115_s29  ;;  %p1123_p1 = scmp.lt.u32.totalorder %s1115_s29, %s1619_s6 }
 0x178   : > { %p1117_p9 = pnand %p1116_p8, %p1368_p7 }
 0x179   : > { %p1122_p0 = por %p1121_p13, %p1120_p11 }
 0x17a   : > { %p1118_p10 = pneg %p1117_p9 }
 0x17b   : > { %p1124_p2 = por %p1123_p1, %p1122_p0 }
 0x17d   : > { %p1125_p3 = pnand %p1124_p2, %p1118_p10 }
 0x17f   : > { %1128 = shalt.err (!%p1125_p3)
}
 0x180   : > { %s1279_s23 = smov 128   ;;  %s1280_s26 = smov 8  }
 0x181   : > { %947 = dma.vmem_to_hbm [thread:$0]  (%p1368_p7), %s1621_s7, 2048, %s1619_s6, %s1629_s8, %s1279_s23, %s1279_s23, %s1280_s26  }
 0x182 PF: > { %p953_p4 = scmp.ge.s32.totalorder %s1243_s18, 2  ;;  %s640_s14 = sand.u32 1, %s1207_s9  }
 0x183   : > { %s641_s15 = scalar_lea.sflag [#allocation4], %s640_s14 }
 0x184   : > { %p950_p5 = pnand %p953_p4, %p1376_p12 }
 0x186   : > { %1202 = dma.done.wait (!%p950_p5), %s641_s15, 2048  }
 0x187   : > { %1204 = vsyncadd (!%p950_p5), %s641_s15, 4294965248  ;;  %s15_s18 = sadd.s32 1, %s1243_s18   ;;  %s1702_s27 = sld [smem:[#allocation6_spill]] }
 0x188   : > { %p12_p6 = scmp.ge.s32.totalorder %s15_s18, 8   ;;  %s1703_s7 = sld [smem:[#allocation7_spill]] }
 0x189   : > { %s1704_s9 = smov %s1211_s10  ;;  %s1705_s10 = smov %s1215_s11 }
 0x18a   : > { %s1706_s11 = smov %s1381_s3  ;;  %s1707_s12 = smov %s1223_s13 }
 0x18b   : > { %s1708_s13 = smov %s1384_s4  ;;  %s1709_s14 = smov %s1235_s16 }
 0x18c   : > { %s1710_s15 = smov %s1239_s17  ;;  %14 = sbr.rel (!%p12_p6) target bundleno = 8 (0x8), region = 155 }
 0x18d   : > { %s1711_s16 = smov %s1702_s27 }
 0x18e   : > { %s1712_s17 = smov %s1703_s7 }
 0x193   :  { %646 = vsyncpa [#allocation4], 1 }
 0x194   :  { %648 = vsyncpa [#allocation4 + $0x1], 1 }

</bundles_post_ra>
